<compile_context>
chip_gen: v5e
topology: v5e:2x2
jax: 0.10.0
libtpu: 0.0.40
codegen_flags: <defaults>
</compile_context>

<pallas_src>
import numpy as np
import jax
import jax.numpy as jnp
from jax import lax
from jax.experimental import pallas as pl
from jax.experimental.pallas import tpu as pltpu


# Slab-path limits (chosen so padded VMEM footprint stays well under the
# default scoped VMEM limit on v5e/v6e/v7x):
#   (V, 8) scratch lane-pads to V*128*4 B  -> <= 4 MiB at V = 8192
#   (P, 8) pred block lane-pads to P*128*4 -> <= 2 MiB at P = 4096
_SLAB_MAX_V = 8192
_SLAB_MAX_P = 4096


def _round_up(x, m):
    return ((x + m - 1) // m) * m


# ---------------------------------------------------------------------------
# Path A: small volume -- gt slab resident in VMEM, in-register gather.
# ---------------------------------------------------------------------------
def _make_slab_kernel(P, Cp, Vp):
    n_chunks = Vp // 128

    def kernel(ind_ref, pred_ref, gt_ref, out_ref, gt_t_ref):
        # ind_ref : (P,)      int32 SMEM  flat spatial index per point
        # pred_ref: (P, Cp)   f32   VMEM  predictions (channel-padded)
        # gt_ref  : (Cp, Vp)  f32   VMEM  gt slab, native channel-major layout
        # out_ref : (1, 1)    f32   SMEM  sum of squared errors
        # gt_t_ref: (Vp, Cp)  f32   VMEM  transposed slab (point-major rows)

        # One-time relayout (Cp, Vp) -> (Vp, Cp) in 128-lane chunks so each
        # chunk is a single (8,128)-vreg XLU transpose.
        for j in range(n_chunks):
            gt_t_ref[pl.ds(j * 128, 128), :] = jnp.transpose(
                gt_ref[:, pl.ds(j * 128, 128)], (1, 0))

        def body(p, acc):
            g = gt_t_ref[pl.ds(ind_ref[p], 1), :]             # (1, Cp)
            g = jnp.where(g > 0.0, jnp.float32(1.0), g)       # binarize positives
            d = pred_ref[pl.ds(p, 1), :] - g
            return acc + d * d

        acc = lax.fori_loop(0, P, body, jnp.zeros((1, Cp), jnp.float32))
        out_ref[0, 0] = jnp.sum(acc)

    return kernel


def _point_loss_slab(pred_f, gt_cv, ind, P, C, V):
    Cp = _round_up(max(C, 8), 8)
    Vp = _round_up(V, 128)
    gt_pad = jnp.pad(gt_cv, ((0, Cp - C), (0, Vp - V)))        # (Cp, Vp)
    pred_pad = jnp.pad(pred_f, ((0, 0), (0, Cp - C)))          # (P, Cp)

    out = pl.pallas_call(
        _make_slab_kernel(P, Cp, Vp),
        out_shape=jax.ShapeDtypeStruct((1, 1), jnp.float32),
        grid_spec=pltpu.PrefetchScalarGridSpec(
            num_scalar_prefetch=1,
            grid=(1,),
            in_specs=[
                pl.BlockSpec((P, Cp), lambda i, ind_ref: (0, 0)),    # pred
                pl.BlockSpec((Cp, Vp), lambda i, ind_ref: (0, 0)),   # gt slab
            ],
            out_specs=pl.BlockSpec((1, 1), lambda i, ind_ref: (0, 0),
                                   memory_space=pltpu.SMEM),
            scratch_shapes=[pltpu.VMEM((Vp, Cp), jnp.float32)],
        ),
        compiler_params=pltpu.CompilerParams(
            dimension_semantics=("arbitrary",)),
        cost_estimate=pl.CostEstimate(
            flops=4 * P * Cp + Vp * Cp,
            transcendentals=0,
            bytes_accessed=Vp * Cp * 4 + P * Cp * 4 + P * 4),
    )(ind, pred_pad, gt_pad)
    return out[0, 0]


# ---------------------------------------------------------------------------
# Path B: large volume -- per-point (C, 1) column DMA from native-layout HBM.
# ---------------------------------------------------------------------------
def _make_hbm_kernel(P, BP, C):

    def kernel(ind_ref, pred_ref, gt_ref, out_ref, gbuf, sem):
        # ind_ref : (n_blocks, BP) int32 SMEM  flat indices, one row per block
        # pred_ref: (C, BP)  f32 VMEM  transposed prediction block
        # gt_ref  : (C, V)   f32 HBM   native-layout gt (pl.ANY, manual DMA)
        # out_ref : (1, 1)   f32 SMEM  partial sum of squared errors
        # gbuf    : (C, BP)  f32 VMEM  gathered gt columns
        # sem     : (1,) DMA semaphore shared by the (equal-sized) column copies
        blk = pl.program_id(0)
        base = blk * BP

        # Issue all column-gather DMAs for this block.  Every SMEM index is
        # read exactly once and strictly before any .wait(); padded points
        # issue nothing.
        @pl.loop(0, BP)
        def _issue(i):
            @pl.when(base + i < P)
            def _():
                idx = ind_ref[blk, i]
                pltpu.make_async_copy(
                    gt_ref.at[:, pl.ds(idx, 1)],
                    gbuf.at[:, pl.ds(i, 1)],
                    sem.at[0],
                ).start()

        # Wait once per issued copy.  All copies are identical (C, 1) size, so
        # the source half of the wait descriptor is a fixed dummy slice (no
        # SMEM re-reads, no duplicated index/scalar work in the wait loop).
        @pl.loop(0, BP)
        def _wait(i):
            @pl.when(base + i < P)
            def _():
                pltpu.make_async_copy(
                    gt_ref.at[:, pl.ds(0, 1)],
                    gbuf.at[:, pl.ds(i, 1)],
                    sem.at[0],
                ).wait()

        gt_p = gbuf[...]                                        # (C, BP)
        gt_p = jnp.where(gt_p > 0.0, jnp.float32(1.0), gt_p)    # binarize positives
        diff = pred_ref[...] - gt_p                             # (C, BP)

        # Zero contributions from padded points (lanes >= P - base).
        lane = lax.broadcasted_iota(jnp.int32, gt_p.shape, 1)
        diff = jnp.where(lane + base < P, diff, jnp.float32(0.0))

        out_ref[0, 0] = jnp.sum(diff * diff)

    return kernel


def _point_loss_hbm(pred_f, gt_cv, ind, P, C, V):
    if P <= 128:
        BP = _round_up(P, 8)          # single block
    elif P <= 4096:
        BP = 128                      # n_blocks >= 2 -> both v7x cores get work
    else:
        BP = 512                      # amortize ~0.35us/grid-step overhead
    P_pad = _round_up(P, BP)
    n_blocks = P_pad // BP

    ind_2d = jnp.pad(ind, (0, P_pad - P)).reshape(n_blocks, BP)
    # Transposing pred is O(P*C) HBM traffic (independent of V), so the kernel
    # can work directly in the gather's channel-sublane orientation.
    pred_t = jnp.transpose(jnp.pad(pred_f, ((0, P_pad - P), (0, 0))))  # (C, P_pad)

    partials = pl.pallas_call(
        _make_hbm_kernel(P, BP, C),
        out_shape=jax.ShapeDtypeStruct((n_blocks, 1), jnp.float32),
        grid_spec=pltpu.PrefetchScalarGridSpec(
            num_scalar_prefetch=1,
            grid=(n_blocks,),
            in_specs=[
                pl.BlockSpec((C, BP), lambda i, ind_ref: (0, i)),    # pred_t
                pl.BlockSpec(memory_space=pl.ANY),                   # gt (HBM)
            ],
            out_specs=pl.BlockSpec((1, 1), lambda i, ind_ref: (i, 0),
                                   memory_space=pltpu.SMEM),
            scratch_shapes=[
                pltpu.VMEM((C, BP), jnp.float32),
                pltpu.SemaphoreType.DMA((1,)),
            ],
        ),
        compiler_params=pltpu.CompilerParams(
            dimension_semantics=("parallel",)),
        cost_estimate=pl.CostEstimate(
            flops=4 * P * C,
            transcendentals=0,
            bytes_accessed=P * C * 4 + P_pad * C * 4 + P_pad * 4 + 4 * n_blocks),
    )(ind_2d, pred_t, gt_cv)
    return jnp.sum(partials)


# ---------------------------------------------------------------------------
# Public wrapper
# ---------------------------------------------------------------------------
def point_loss(pred, gt, points, *, force_hbm_gather=False):
    """pred: (P, C) f32, gt: (1, C, *spatial) f32, points: (1, P, d) f32."""
    b, c, *volume_shape = gt.shape
    assert b == 1, "PointLoss index construction assumes batch == 1"
    d = len(volume_shape)
    v = int(np.prod(volume_shape))
    P = points.shape[1]

    # Flat spatial index per point, exact int32 arithmetic, clamped to [0, V).
    strides = jnp.asarray(
        [int(np.prod(volume_shape[i + 1:])) for i in range(d)], dtype=jnp.int32)
    pts_i = jnp.floor(points.astype(jnp.float32)).astype(jnp.int32)   # (1, P, d)
    ind = jnp.sum(pts_i * strides, axis=-1)[0]                        # (P,)
    ind = jnp.clip(ind, 0, v - 1).astype(jnp.int32)

    # gt stays in its native channel-major layout: (1, C, ...) -> (C, V) is a
    # free reshape.  No O(V*C) transpose anywhere.
    gt_cv = gt.reshape(c, v).astype(jnp.float32)
    pred_f = pred.astype(jnp.float32)

    use_slab = (v <= _SLAB_MAX_V) and (P <= _SLAB_MAX_P) and not force_hbm_gather
    if use_slab:
        total = _point_loss_slab(pred_f, gt_cv, ind, P, c, v)
    else:
        total = _point_loss_hbm(pred_f, gt_cv, ind, P, c, v)
    return total / jnp.float32(P * c)


def point_loss_ref(pred, gt, points):
    """Pure-JAX reference mirroring the torch forward (MSE-mean criterion)."""
    b, c, *volume_shape = gt.shape
    d = len(volume_shape)
    v = int(np.prod(volume_shape))
    ind_kernel = jnp.asarray(
        [float(np.prod(volume_shape[i + 1:])) for i in range(d)], dtype=jnp.float32)
    gt_flat = gt.reshape(b, c, v)
    ind = jnp.matmul(jnp.floor(points), ind_kernel).astype(jnp.int32)  # (1, P)
    ind = jnp.squeeze(ind, axis=0)                                     # (P,)
    gt_p = jnp.take(gt_flat[0], ind, axis=1)                           # (c, P)
    gt_p = jnp.transpose(gt_p)                                         # (P, c)
    gt_p = jnp.where(gt_p > 0, 1.0, gt_p)
    return jnp.mean((pred - gt_p) ** 2)


if __name__ == "__main__":
    key = jax.random.PRNGKey(0)
    k1, k2, k3, k4, k5 = jax.random.split(key, 5)

    B, C, H, W = 1, 4, 16, 16
    gt = jax.random.normal(k1, (B, C, H, W), dtype=jnp.float32)

    # 1) Small problem: exercises the VMEM-slab path.
    P1 = 8
    pts1 = jax.random.uniform(k2, (B, P1, 2), dtype=jnp.float32,
                              minval=0.0, maxval=float(H))
    pred1 = jax.random.normal(k3, (P1, C), dtype=jnp.float32)
    out1 = point_loss(pred1, gt, pts1)
    jax.block_until_ready(out1)
    ref1 = point_loss_ref(pred1, gt, pts1)
    np.testing.assert_allclose(np.asarray(out1), np.asarray(ref1),
                               rtol=1e-5, atol=1e-5)

    # 2) Same data through the large-volume HBM-gather path (single block).
    out2 = point_loss(pred1, gt, pts1, force_hbm_gather=True)
    jax.block_until_ready(out2)
    np.testing.assert_allclose(np.asarray(out2), np.asarray(ref1),
                               rtol=1e-5, atol=1e-5)

    # 3) HBM-gather path with multiple blocks and a partially-filled last block.
    P2 = 200
    pts2 = jax.random.uniform(k4, (B, P2, 2), dtype=jnp.float32,
                              minval=0.0, maxval=float(H))
    pred2 = jax.random.normal(k5, (P2, C), dtype=jnp.float32)
    out3 = point_loss(pred2, gt, pts2, force_hbm_gather=True)
    jax.block_until_ready(out3)
    ref3 = point_loss_ref(pred2, gt, pts2)
    np.testing.assert_allclose(np.asarray(out3), np.asarray(ref3),
                               rtol=1e-5, atol=1e-5)

    print("KERNEL_OK")
</pallas_src>

<mosaic_0001>
module attributes {stable_mosaic.version = 11 : i64} {
  func.func @kernel(%arg0: i32, %arg1: memref<8xi32, #tpu.memory_space<smem>>, %arg2: memref<8x8xf32, #tpu.memory_space<vmem>>, %arg3: memref<8x256xf32, #tpu.memory_space<vmem>>, %arg4: memref<1x1xf32, #tpu.memory_space<smem>>, %arg5: memref<256x8xf32, #tpu.memory_space<vmem>>) attributes {dimension_semantics = [#tpu.dimension_semantics<arbitrary>], iteration_bounds = array<i64: 1>, scalar_prefetch = 1 : i64, scratch_operands = 1 : i64, tpu.core_type = #tpu.core_type<tc>, window_params = [{pipeline_mode = #tpu.pipeline_mode<synchronous>, transform_indices = @transform_0, window_bounds = array<i64: 8, 8>}, {pipeline_mode = #tpu.pipeline_mode<synchronous>, transform_indices = @transform_1, window_bounds = array<i64: 8, 256>}, {transform_indices = @transform_2, window_bounds = array<i64: 1, 1>}]} {
    %c0 = arith.constant 0 : index
    %c0_0 = arith.constant 0 : index
    %0 = vector.load %arg3[%c0, %c0_0] : memref<8x256xf32, #tpu.memory_space<vmem>>, vector<8x128xf32>
    %1 = tpu.transpose %0, [1, 0] : vector<8x128xf32> -> vector<128x8xf32>
    %c0_1 = arith.constant 0 : index
    %c0_2 = arith.constant 0 : index
    %2 = vector.load %arg5[%c0_1, %c0_2] : memref<256x8xf32, #tpu.memory_space<vmem>>, vector<128x8xf32>
    tpu.vector_store %arg5[%c0_1, %c0_2], %1 {strides = array<i32>} : memref<256x8xf32, #tpu.memory_space<vmem>>, vector<128x8xf32>,
    %c0_3 = arith.constant 0 : index
    %c128 = arith.constant 128 : index
    %3 = vector.load %arg3[%c0_3, %c128] : memref<8x256xf32, #tpu.memory_space<vmem>>, vector<8x128xf32>
    %4 = tpu.transpose %3, [1, 0] : vector<8x128xf32> -> vector<128x8xf32>
    %c128_4 = arith.constant 128 : index
    %c0_5 = arith.constant 0 : index
    %5 = vector.load %arg5[%c128_4, %c0_5] : memref<256x8xf32, #tpu.memory_space<vmem>>, vector<128x8xf32>
    tpu.vector_store %arg5[%c128_4, %c0_5], %4 {strides = array<i32>} : memref<256x8xf32, #tpu.memory_space<vmem>>, vector<128x8xf32>,
    %cst = arith.constant 0.000000e+00 : f32
    %6 = vector.broadcast %cst : f32 to vector<1x8xf32>
    %c0_i32 = arith.constant 0 : i32
    %c8_i32 = arith.constant 8 : i32
    %7 = arith.addi %c0_i32, %c8_i32 : i32
    %c1_i32 = arith.constant 1 : i32
    %8 = scf.for %arg6 = %c0_i32 to %7 step %c1_i32 iter_args(%arg7 = %6) -> (vector<1x8xf32>)  : i32 {
      %14 = arith.index_cast %arg6 : i32 to index
      %15 = memref.load %arg1[%14] : memref<8xi32, #tpu.memory_space<smem>>
      %16 = arith.index_cast %15 : i32 to index
      %c0_10 = arith.constant 0 : index
      %17 = vector.load %arg5[%16, %c0_10] : memref<256x8xf32, #tpu.memory_space<vmem>>, vector<1x8xf32>
      %cst_11 = arith.constant 0.000000e+00 : f32
      %18 = vector.broadcast %cst_11 : f32 to vector<1x8xf32>
      %19 = arith.cmpf ogt, %17, %18 : vector<1x8xf32>
      %cst_12 = arith.constant 1.000000e+00 : f32
      %20 = vector.broadcast %cst_12 : f32 to vector<1x8xf32>
      %21 = arith.select %19, %20, %17 : vector<1x8xi1>, vector<1x8xf32>
      %22 = arith.index_cast %arg6 : i32 to index
      %c0_13 = arith.constant 0 : index
      %23 = vector.load %arg2[%22, %c0_13] : memref<8x8xf32, #tpu.memory_space<vmem>>, vector<1x8xf32>
      %24 = arith.subf %23, %21 : vector<1x8xf32>
      %25 = arith.mulf %24, %24 : vector<1x8xf32>
      %26 = arith.addf %arg7, %25 : vector<1x8xf32>
      scf.yield %26 : vector<1x8xf32>
    }
    %c8_i32_6 = arith.constant 8 : i32
    %9 = vector.shape_cast %8 : vector<1x8xf32> to vector<1x1x8xf32>
    %cst_7 = arith.constant dense<0.000000e+00> : vector<1xf32>
    %10 = vector.multi_reduction <add>, %9, %cst_7 [1, 2] : vector<1x1x8xf32> to vector<1xf32>
    %11 = vector.shape_cast %10 : vector<1xf32> to vector<1x1x1xf32>
    %12 = vector.extract %11[0, 0, 0] : f32 from vector<1x1x1xf32>
    %c0_8 = arith.constant 0 : index
    %c0_9 = arith.constant 0 : index
    %13 = memref.load %arg4[%c0_8, %c0_9] : memref<1x1xf32, #tpu.memory_space<smem>>
    memref.store %12, %arg4[%c0_8, %c0_9] : memref<1x1xf32, #tpu.memory_space<smem>>
    return
  }
  func.func @transform_0(%arg0: i32, %arg1: memref<8xi32, #tpu.memory_space<smem>>) -> (i32, i32) {
    %c0_i32 = arith.constant 0 : i32
    %c0_i32_0 = arith.constant 0 : i32
    %c0_i32_1 = arith.constant 0 : i32
    return %c0_i32, %c0_i32_0 : i32, i32
  }
  func.func @transform_1(%arg0: i32, %arg1: memref<8xi32, #tpu.memory_space<smem>>) -> (i32, i32) {
    %c0_i32 = arith.constant 0 : i32
    %c0_i32_0 = arith.constant 0 : i32
    %c0_i32_1 = arith.constant 0 : i32
    return %c0_i32, %c0_i32_0 : i32, i32
  }
  func.func @transform_2(%arg0: i32, %arg1: memref<8xi32, #tpu.memory_space<smem>>) -> (i32, i32) {
    %c0_i32 = arith.constant 0 : i32
    %c0_i32_0 = arith.constant 0 : i32
    %c0_i32_1 = arith.constant 0 : i32
    return %c0_i32, %c0_i32_0 : i32, i32
  }
}

</mosaic_0001>

<bundles_post_ra>
// kernel: tpu_custom_call.1
= control target key start
LH: loop header
LB: loop body
LE: loop exit
PB: predicated region body
PF: predicated region fallthrough
CT: control target
= control target key end

     0   :  { %s324_s15 = smov [#allocation4]   ;;  %s392_s0 = inlined_call_operand.hbm [shape: s32[8], index: 0, kind: input, shape index: {}]   ;;  %s393_s1 = inlined_call_operand.hbm [shape: f32[8,8], index: 1, kind: input, shape index: {}]   ;;  %s394_s2 = inlined_call_operand.hbm [shape: f32[8,256], index: 2, kind: input, shape index: {}]   ;;  %s395_s3 = inlined_call_operand.hbm [shape: f32[1,1], index: 3, kind: output, shape index: {}]  }
   0x1   :  { %s9_s14 = sshll.u32 %s392_s0, 4  ;;  %s10_s14 = int_to_ptr.hbm [resolvable:$true] %s9_s14 }
   0x2   :  { %12 = dma.hbm_to_smem %s10_s14, 16, %s324_s15, [#allocation3] }
   0x3   :  { %308 = dma.done.wait [#allocation3], 16 }
   0x4   :  { %309 = vsyncadd [#allocation3], 4294967280 }
   0x5   :  { %15 = sfence }
   0x6   :  { %16 = vsyncpa [#allocation6], 0 }
   0x7   :  { %17 = vsyncpa [#allocation9], 0 }
   0x8   :  { %18 = vsyncpa [#allocation7], 0  ;;  %s24_s18 = sshll.u32 %s393_s1, 4  ;;  %s325_s19 = smov [#allocation5]   ;;  %s25_s18 = int_to_ptr.hbm [resolvable:$true] %s24_s18 }
   0x9   :  { %s26_s20 = sshll.u32 %s325_s19, 4  ;;  %s35_s0 = sshll.u32 %s394_s2, 4  ;;  %s27_s20 = int_to_ptr.vmem [resolvable:$true] %s26_s20  ;;  %s36_s0 = int_to_ptr.hbm [resolvable:$true] %s35_s0 }
   0xa   :  { %29 = dma.hbm_to_vmem [thread:$0]  %s25_s18, 128, %s27_s20, [#allocation6]  }
   0xb   :  { %s326_s23 = smov [#allocation8]  }
   0xc   :  { %s37_s24 = sshll.u32 %s326_s23, 4  ;;  %s38_s24 = int_to_ptr.vmem [resolvable:$true] %s37_s24 }
   0xd   :  { %40 = dma.hbm_to_vmem [thread:$0]  %s36_s0, 256, %s38_s24, [#allocation9]  }
   0xe   :  { %310 = dma.done.wait [#allocation6], 128  }
   0xf   :  { %311 = vsyncadd [#allocation6], 4294967168 }
  0x10   :  { %312 = dma.done.wait [#allocation9], 256  }
  0x11   :  { %313 = vsyncadd [#allocation9], 4294967040  ;;  %v49_v0 = vld [vmem:[#allocation8] sm:$0xff]  ;;  %v99_v1 = vld [vmem:[#allocation8 + $0x8] sm:$0xff]  ;;  %vm82_vm0 = vcmask 64512   ;;  %v316_v34 = vmov 0.0  }
  0x12   :  { %50 = vxpose.xlu0.b32.start.end [1/1] (short) %v49_v0, 128  ;;  %s320_s1 = smov 0  }
  0x92   :  { %100 = vxpose.xlu0.b32.start.end [1/1] (short) %v99_v1, 128 }
  0xb6   :  { %v66_v2 = vpop.trf.xlu0 }
  0xb7   :  { %83 = vst.msk [vmem:[#allocation2] sm:$0xff] %vm82_vm0, %v66_v2 }
  0xbe   :  { %v67_v3 = vpop.trf.xlu0 }
  0xbf   :  { %84 = vst.msk [vmem:[#allocation2 + $0x8] sm:$0xff] %vm82_vm0, %v67_v3 }
  0xc6   :  { %v68_v4 = vpop.trf.xlu0 }
  0xc7   :  { %85 = vst.msk [vmem:[#allocation2 + $0x10] sm:$0xff] %vm82_vm0, %v68_v4 }
  0xce   :  { %v69_v5 = vpop.trf.xlu0 }
  0xcf   :  { %86 = vst.msk [vmem:[#allocation2 + $0x18] sm:$0xff] %vm82_vm0, %v69_v5 }
  0xd6   :  { %v70_v6 = vpop.trf.xlu0 }
  0xd7   :  { %87 = vst.msk [vmem:[#allocation2 + $0x20] sm:$0xff] %vm82_vm0, %v70_v6 }
  0xde   :  { %v71_v7 = vpop.trf.xlu0 }
  0xdf   :  { %88 = vst.msk [vmem:[#allocation2 + $0x28] sm:$0xff] %vm82_vm0, %v71_v7 }
  0xe6   :  { %v72_v8 = vpop.trf.xlu0 }
  0xe7   :  { %89 = vst.msk [vmem:[#allocation2 + $0x30] sm:$0xff] %vm82_vm0, %v72_v8 }
  0xee   :  { %v73_v9 = vpop.trf.xlu0 }
  0xef   :  { %90 = vst.msk [vmem:[#allocation2 + $0x38] sm:$0xff] %vm82_vm0, %v73_v9 }
  0xf6   :  { %v74_v10 = vpop.trf.xlu0 }
  0xf7   :  { %91 = vst.msk [vmem:[#allocation2 + $0x40] sm:$0xff] %vm82_vm0, %v74_v10 }
  0xfe   :  { %v75_v11 = vpop.trf.xlu0 }
  0xff   :  { %92 = vst.msk [vmem:[#allocation2 + $0x48] sm:$0xff] %vm82_vm0, %v75_v11 }
 0x106   :  { %v76_v12 = vpop.trf.xlu0 }
 0x107   :  { %93 = vst.msk [vmem:[#allocation2 + $0x50] sm:$0xff] %vm82_vm0, %v76_v12 }
 0x10e   :  { %v77_v13 = vpop.trf.xlu0 }
 0x10f   :  { %94 = vst.msk [vmem:[#allocation2 + $0x58] sm:$0xff] %vm82_vm0, %v77_v13 }
 0x116   :  { %v78_v14 = vpop.trf.xlu0 }
 0x117   :  { %95 = vst.msk [vmem:[#allocation2 + $0x60] sm:$0xff] %vm82_vm0, %v78_v14 }
 0x11e   :  { %v79_v15 = vpop.trf.xlu0 }
 0x11f   :  { %96 = vst.msk [vmem:[#allocation2 + $0x68] sm:$0xff] %vm82_vm0, %v79_v15 }
 0x126   :  { %v80_v16 = vpop.trf.xlu0 }
 0x127   :  { %97 = vst.msk [vmem:[#allocation2 + $0x70] sm:$0xff] %vm82_vm0, %v80_v16 }
 0x12e   :  { %v81_v17 = vpop.trf.xlu0 }
 0x12f   :  { %98 = vst.msk [vmem:[#allocation2 + $0x78] sm:$0xff] %vm82_vm0, %v81_v17 }
 0x136   :  { %v116_v18 = vpop.trf.xlu0 }
 0x137   :  { %132 = vst.msk [vmem:[#allocation2 + $0x80] sm:$0xff] %vm82_vm0, %v116_v18 }
 0x13e   :  { %v117_v19 = vpop.trf.xlu0 }
 0x13f   :  { %133 = vst.msk [vmem:[#allocation2 + $0x88] sm:$0xff] %vm82_vm0, %v117_v19 }
 0x146   :  { %v118_v20 = vpop.trf.xlu0 }
 0x147   :  { %134 = vst.msk [vmem:[#allocation2 + $0x90] sm:$0xff] %vm82_vm0, %v118_v20 }
 0x14e   :  { %v119_v21 = vpop.trf.xlu0 }
 0x14f   :  { %135 = vst.msk [vmem:[#allocation2 + $0x98] sm:$0xff] %vm82_vm0, %v119_v21 }
 0x156   :  { %v120_v22 = vpop.trf.xlu0 }
 0x157   :  { %136 = vst.msk [vmem:[#allocation2 + $0xa0] sm:$0xff] %vm82_vm0, %v120_v22 }
 0x15e   :  { %v121_v23 = vpop.trf.xlu0 }
 0x15f   :  { %137 = vst.msk [vmem:[#allocation2 + $0xa8] sm:$0xff] %vm82_vm0, %v121_v23 }
 0x166   :  { %v122_v24 = vpop.trf.xlu0 }
 0x167   :  { %138 = vst.msk [vmem:[#allocation2 + $0xb0] sm:$0xff] %vm82_vm0, %v122_v24 }
 0x16e   :  { %v123_v25 = vpop.trf.xlu0 }
 0x16f   :  { %139 = vst.msk [vmem:[#allocation2 + $0xb8] sm:$0xff] %vm82_vm0, %v123_v25 }
 0x176   :  { %v124_v26 = vpop.trf.xlu0 }
 0x177   :  { %140 = vst.msk [vmem:[#allocation2 + $0xc0] sm:$0xff] %vm82_vm0, %v124_v26 }
 0x17e   :  { %v125_v27 = vpop.trf.xlu0 }
 0x17f   :  { %141 = vst.msk [vmem:[#allocation2 + $0xc8] sm:$0xff] %vm82_vm0, %v125_v27 }
 0x186   :  { %v126_v28 = vpop.trf.xlu0 }
 0x187   :  { %142 = vst.msk [vmem:[#allocation2 + $0xd0] sm:$0xff] %vm82_vm0, %v126_v28 }
 0x18e   :  { %v127_v29 = vpop.trf.xlu0 }
 0x18f   :  { %143 = vst.msk [vmem:[#allocation2 + $0xd8] sm:$0xff] %vm82_vm0, %v127_v29 }
 0x196   :  { %v128_v30 = vpop.trf.xlu0 }
 0x197   :  { %144 = vst.msk [vmem:[#allocation2 + $0xe0] sm:$0xff] %vm82_vm0, %v128_v30 }
 0x19e   :  { %v129_v31 = vpop.trf.xlu0 }
 0x19f   :  { %145 = vst.msk [vmem:[#allocation2 + $0xe8] sm:$0xff] %vm82_vm0, %v129_v31 }
 0x1a6   :  { %v130_v32 = vpop.trf.xlu0 }
 0x1a7   :  { %146 = vst.msk [vmem:[#allocation2 + $0xf0] sm:$0xff] %vm82_vm0, %v130_v32 }
 0x1ae   :  { %v131_v33 = vpop.trf.xlu0 }
 0x1af   :  { %147 = vst.msk [vmem:[#allocation2 + $0xf8] sm:$0xff] %vm82_vm0, %v131_v33 }
 0x1b0 LB: > { %s155_s2 = sld [smem:[#allocation4 + %s322_s1]]  ;;  %s160_s26 = scalar_lea.vmem [#allocation5], %s322_s1  ;;  %s322_s1 = sphi %s320_s1, %s153_s1   ;;  %v318_v34 = vphi %v316_v34, %v317_v34  }
 0x1b1   : > { %v161_v36 = vld [vmem:[%s160_s26] sm:$0x1]  ;;  %s153_s1 = sadd.s32 1, %s322_s1  }
 0x1b2   : > { %p150_p0 = scmp.ge.s32.totalorder %s153_s1, 8  }
 0x1b3   :  { %vm165_vm2 = vcmask (%p150_p0), 57344   ;;  %s183_s29 = sshll.u32 (%p150_p0), %s395_s3, 4  ;;  %s327_s4 = smov (%p150_p0), [#allocation10]   ;;  %s184_s29 = int_to_ptr.hbm [resolvable:$true] %s183_s29 }
 0x1b6   : > { %s156_s25 = scalar_lea.vmem [#allocation2], %s155_s2 }
 0x1b7   : > { %v157_v35 = vld [vmem:[%s156_s25] sm:$0x1] }
 0x1b8   : > { %vm158_vm1 = vcmp.gt.f32.partialorder %v157_v35, 0.0 }
 0x1b9   : > { %v159_v37 = vsel %vm158_vm1, 1.0, %v157_v35 }
 0x1ba   : > { %v162_v38 = vsub.f32 %v161_v36, %v159_v37 }
 0x1bc   : > { %v163_v39 = vmul.f32 %v162_v38, %v162_v38  ;;  %152 = sbr.rel (!%p150_p0) target bundleno = 432 (0x1b0), region = 46 }
 0x1be   : > { %v164_v40 = vadd.f32 %v318_v34, %v163_v39  }
 0x1c0   : > { %v317_v34 = vmov %v164_v40   ;;  %v166_v41 = vsel (%p150_p0), %vm165_vm2, %v164_v40, 0.0 }
 0x1c1   :  { %167 = vadd.xlane.f32.xlu0 %v166_v41 }
 0x234   :  { %v168_v42 = vpop.xlane.xlu0 %167 }
 0x235   :  { %v169_v43 = vrot.slane %v168_v42, 4 }
 0x237   :  { %v170_v44 = vadd.f32 %v169_v43, %v168_v42 }
 0x239   :  { %v171_v45 = vrot.slane %v170_v44, 2 }
 0x23b   :  { %v172_v46 = vadd.f32 %v171_v45, %v170_v44 }
 0x23d   :  { %v173_v47 = vrot.slane %v172_v46, 1 }
 0x23f   :  { %v174_v48 = vadd.f32 %v173_v47, %v172_v46 }
 0x241   :  { %205 = vpush %v174_v48 }
 0x272   :  { %s206_s30 = spop %205 }
 0x273   :  { %177 = sst [smem:[#allocation10]] %s206_s30 }
 0x274   :  { %186 = dma.smem_to_hbm %s327_s4, 16, %s184_s29, [#allocation7]  }
 0x275   :  { %314 = dma.done.wait [#allocation7], 16  }
 0x276   :  { %315 = vsyncadd [#allocation7], 4294967280 }
 0x277   :  { %191 = sfence }
 0x278   :  { %192 = vsyncpa [#allocation6], 1 }
 0x279   :  { %193 = vsyncpa [#allocation9], 1 }
 0x27a   :  { %194 = vsyncpa [#allocation7], 1 }

</bundles_post_ra>
